<compile_context>
chip_gen: v5e
topology: v5e:2x2
jax: 0.10.0
libtpu: 0.0.40
codegen_flags: <defaults>
</compile_context>

<pallas_src>
import functools

import jax
import jax.numpy as jnp
from jax import lax
from jax.experimental import pallas as pl
from jax.experimental.pallas import tpu as pltpu

HIDDEN = 8      # hidden_channels (dims per head)
HEADS = 8       # attention heads in conv1
H1_PAD = 128    # lane-padded width of the conv1 activations (valid = HEADS*HIDDEN)
OUT_PAD = 128   # lane-padded width of the fused (embeddings | logits) output slab

_NEG = -1e30
_LEAKY = 0.2


# ---------------------------------------------------------------------------
# Preamble kernels: tile-invariant per-node work, computed ONCE per layer
# (hoisted out of the destination-row grid).  Ungridded: per-node tensors are
# tiny compared to the O(N^2) adjacency work.
# ---------------------------------------------------------------------------

def _project1_kernel(x_ref, w_ref, asrcp_ref, adstp_t_ref,
                     hh_ref, asrc_ref, adst_ref, *, heads, hidden):
    # hs = x @ W on the MXU (bf16 in, f32 accumulate)
    hs = jnp.dot(x_ref[...].astype(jnp.bfloat16), w_ref[...].astype(jnp.bfloat16),
                 preferred_element_type=jnp.float32)                     # [N, H*hid]
    # all-heads attention score terms (source and destination sides), once per node
    asrc_ref[...] = jnp.einsum('hf,nf->hn', asrcp_ref[...], hs,
                               preferred_element_type=jnp.float32)[:, None, :]  # [H,1,N]
    adst_ref[...] = jnp.dot(hs, adstp_t_ref[...],
                            preferred_element_type=jnp.float32)          # [N, H]
    # per-head source features [H, N, hid] (bf16) -- the re-layout runs once here,
    # not once per destination-row grid step.
    hh = jnp.stack([hs[:, h * hidden:(h + 1) * hidden] for h in range(heads)], axis=0)
    hh_ref[...] = hh.astype(hh_ref.dtype)


def _project2_kernel(h1_ref, w2_ref, asrc2_ref, adst2_t_ref,
                     hs2_ref, asrc_ref, adst_ref):
    # h1 is stored bf16; w2 rows for the pad columns are zero.
    hs2 = jnp.dot(h1_ref[...], w2_ref[...].astype(jnp.bfloat16),
                  preferred_element_type=jnp.float32)                    # [N, hid]
    asrc_ref[...] = jnp.einsum('hf,nf->hn', asrc2_ref[...], hs2,
                               preferred_element_type=jnp.float32)       # [1, N]
    adst_ref[...] = jnp.dot(hs2, adst2_t_ref[...],
                            preferred_element_type=jnp.float32)          # [N, 1]
    hs2_ref[...] = hs2.astype(hs2_ref.dtype)


# ---------------------------------------------------------------------------
# Gridded per-destination-row-tile attention kernels.
# ---------------------------------------------------------------------------

def _gat_conv1_kernel(adj_ref, hh_ref, asrc_ref, adst_ref, b_ref,
                      h1_ref, agg_ref, *, heads, hidden):
    # adj_ref : [T, N] int8 (dst rows of this tile), hh_ref : [H, N, hid] bf16
    # asrc_ref: [H, 1, N] f32, adst_ref : [T, H] f32, agg_ref : VMEM [H, T, hid] f32
    mask = adj_ref[...] > 0                                              # [T, N]
    a_dst_tile = adst_ref[...]                                           # [T, H]
    t = a_dst_tile.shape[0]

    def head_body(h, carry):
        # one-hot lane select of this head's destination term (avoids dynamic
        # lane slicing; the [T, H] operand is tiny)
        hsel = (lax.broadcasted_iota(jnp.int32, (1, heads), 1) == h).astype(jnp.float32)
        a_dst_h = jnp.sum(a_dst_tile * hsel, axis=1, keepdims=True)      # [T, 1]
        a_src_h = asrc_ref[h]                                            # [1, N]
        e = a_dst_h + a_src_h                                            # [T, N]
        e = jnp.where(e > 0, e, _LEAKY * e)                              # LeakyReLU(0.2)
        e = jnp.where(mask, e, _NEG)
        e = e - jnp.max(e, axis=-1, keepdims=True)
        p = jnp.exp(e)                     # masked entries underflow to exactly 0
        denom = jnp.sum(p, axis=-1, keepdims=True)     # >= 1 (self loops present)
        alpha = p * pl.reciprocal(denom, approx=True)
        agg_ref[h] = jnp.dot(alpha.astype(jnp.bfloat16), hh_ref[h],
                             preferred_element_type=jnp.float32)         # [T, hid]
        return carry

    # loop (not unroll) over heads -> live softmax temporaries are [T, N], not [H, T, N]
    lax.fori_loop(0, heads, head_body, 0)

    bias = b_ref[...]                                                    # [1, H*hid]
    cols = [jnp.maximum(agg_ref[h] + bias[:, h * hidden:(h + 1) * hidden], 0.0)
            for h in range(heads)]
    pad = h1_ref.shape[-1] - heads * hidden
    if pad > 0:
        cols.append(jnp.zeros((t, pad), jnp.float32))
    # single lane-dense bf16 store of the padded [T, 128] tile
    h1_ref[...] = jnp.concatenate(cols, axis=-1).astype(h1_ref.dtype)
    # TODO(synk): dropout (rate 0.2 on features and attention coeffs) is identity in
    # eval mode, so it is intentionally omitted here.


def _gat_conv2_kernel(adj_ref, hs2_ref, asrc_ref, adst_ref, b_ref, wc_ref, bc_ref,
                      out_ref, *, hidden):
    # single head, concat=False
    e = adst_ref[...] + asrc_ref[...]                                    # [T,1]+[1,N]
    e = jnp.where(e > 0, e, _LEAKY * e)
    e = jnp.where(adj_ref[...] > 0, e, _NEG)
    e = e - jnp.max(e, axis=-1, keepdims=True)
    p = jnp.exp(e)
    denom = jnp.sum(p, axis=-1, keepdims=True)
    alpha = p * pl.reciprocal(denom, approx=True)
    agg = jnp.dot(alpha.astype(jnp.bfloat16), hs2_ref[...],
                  preferred_element_type=jnp.float32)                    # [T, hid]
    emb = agg + b_ref[...]
    logits = jnp.dot(emb, wc_ref[...], preferred_element_type=jnp.float32) + bc_ref[...]
    t = emb.shape[0]
    pad = out_ref.shape[-1] - hidden - logits.shape[-1]
    # lane-dense packed output slab: [emb | logits | zeros]
    out_ref[...] = jnp.concatenate(
        [emb, logits, jnp.zeros((t, pad), jnp.float32)], axis=-1)


# ---------------------------------------------------------------------------
# Wrapper.
# ---------------------------------------------------------------------------

def _pack_attention(a):
    """Per-head attention vectors [heads, hidden] -> block-diagonal [heads, heads*hidden]."""
    h, d = a.shape
    eye = jnp.eye(h, dtype=a.dtype)
    return (eye[:, :, None] * a[None, :, :]).reshape(h, h * d)


def _vmem_capacity_bytes():
    try:
        return int(pltpu.get_tpu_info().vmem_capacity_bytes)
    except Exception:
        return 64 * 1024 * 1024      # conservative (v7x-sized) fallback


def gat_forward(x, adj, params, *, tile_dst=None):
    """2-layer GAT forward (eval mode) + linear classifier as Pallas TPU kernels."""
    n, fin = x.shape

    vmem_cap = _vmem_capacity_bytes()
    # generation-tuned: ~85% of physical VMEM (capped); big dst tiles on the
    # 128 MiB parts (v5e/v6e), smaller on v7x (64 MiB / 2 TensorCores).
    vmem_limit = min(int(vmem_cap * 0.85), 112 * 1024 * 1024)
    if tile_dst is None:
        tile_dst = 512 if vmem_cap >= 96 * 1024 * 1024 else 256
        while tile_dst > 32 and n < 2 * tile_dst:   # keep >= 2 grid steps if possible
            tile_dst //= 2
        tile_dst = min(tile_dst, n)
    assert n % tile_dst == 0
    assert tile_dst % 32 == 0 or tile_dst == n      # int8 adjacency sublane alignment
    grid = (n // tile_dst,)

    # adjacency is the only O(N^2) operand: ship it as int8
    adj_i8 = adj.astype(jnp.int8)

    asrcp1 = _pack_attention(params["asrc1"])             # [H, H*hid]
    adstp1_t = _pack_attention(params["adst1"]).T         # [H*hid, H]
    adst2_t = params["adst2"].T                           # [hid, 1]
    # conv1 activations are stored lane-padded to 128; pad w2 with matching zero rows
    w2p = jnp.pad(params["w2"], ((0, H1_PAD - params["w2"].shape[0]), (0, 0)))

    def full(a):
        # tile-invariant input: whole array, constant block index
        return pl.BlockSpec(a.shape, lambda i: (0,) * a.ndim)

    cparams = pltpu.CompilerParams(dimension_semantics=("parallel",),
                                   vmem_limit_bytes=vmem_limit)
    pre_params = pltpu.CompilerParams(vmem_limit_bytes=vmem_limit)

    # ---- preamble 1: per-node projection + attention score terms (once) ----
    hh, a_src1, a_dst1 = pl.pallas_call(
        functools.partial(_project1_kernel, heads=HEADS, hidden=HIDDEN),
        out_shape=(jax.ShapeDtypeStruct((HEADS, n, HIDDEN), jnp.bfloat16),
                   jax.ShapeDtypeStruct((HEADS, 1, n), jnp.float32),
                   jax.ShapeDtypeStruct((n, HEADS), jnp.float32)),
        grid=(1,),
        in_specs=[full(x), full(params["w1"]), full(asrcp1), full(adstp1_t)],
        out_specs=(pl.BlockSpec((HEADS, n, HIDDEN), lambda i: (0, 0, 0)),
                   pl.BlockSpec((HEADS, 1, n), lambda i: (0, 0, 0)),
                   pl.BlockSpec((n, HEADS), lambda i: (0, 0))),
        compiler_params=pre_params,
    )(x, params["w1"], asrcp1, adstp1_t)

    # ---- conv1 (heads=HEADS, concat=True) + ReLU, gridded over dst-row tiles ----
    ce1 = pl.CostEstimate(
        flops=2 * n * n * HEADS * HIDDEN + 10 * HEADS * n * n,
        transcendentals=HEADS * n * n,
        bytes_accessed=n * n + HEADS * n * (2 * HIDDEN + 4) + 2 * n * H1_PAD)
    h1 = pl.pallas_call(
        functools.partial(_gat_conv1_kernel, heads=HEADS, hidden=HIDDEN),
        out_shape=jax.ShapeDtypeStruct((n, H1_PAD), jnp.bfloat16),
        grid=grid,
        in_specs=[
            pl.BlockSpec((tile_dst, n), lambda i: (i, 0)),        # adjacency rows (int8)
            full(hh),                                             # [H, N, hid] (invariant)
            full(a_src1),                                         # [H, 1, N]   (invariant)
            pl.BlockSpec((tile_dst, HEADS), lambda i: (i, 0)),    # dst-side score terms
            full(params["b1"]),
        ],
        out_specs=pl.BlockSpec((tile_dst, H1_PAD), lambda i: (i, 0)),
        scratch_shapes=[pltpu.VMEM((HEADS, tile_dst, HIDDEN), jnp.float32)],
        compiler_params=cparams,
        cost_estimate=ce1,
    )(adj_i8, hh, a_src1, a_dst1, params["b1"])

    # ---- preamble 2: conv2 projection + score terms (once) ----
    hs2, a_src2, a_dst2 = pl.pallas_call(
        _project2_kernel,
        out_shape=(jax.ShapeDtypeStruct((n, HIDDEN), jnp.bfloat16),
                   jax.ShapeDtypeStruct((1, n), jnp.float32),
                   jax.ShapeDtypeStruct((n, 1), jnp.float32)),
        grid=(1,),
        in_specs=[full(h1), full(w2p), full(params["asrc2"]), full(adst2_t)],
        out_specs=(pl.BlockSpec((n, HIDDEN), lambda i: (0, 0)),
                   pl.BlockSpec((1, n), lambda i: (0, 0)),
                   pl.BlockSpec((n, 1), lambda i: (0, 0))),
        compiler_params=pre_params,
    )(h1, w2p, params["asrc2"], adst2_t)

    # ---- conv2 (heads=1, concat=False) + classifier, same dst-tile grid ----
    ce2 = pl.CostEstimate(
        flops=2 * n * n * HIDDEN + 10 * n * n,
        transcendentals=n * n,
        bytes_accessed=n * n + n * (2 * HIDDEN + 8) + 4 * n * OUT_PAD)
    slab = pl.pallas_call(
        functools.partial(_gat_conv2_kernel, hidden=HIDDEN),
        out_shape=jax.ShapeDtypeStruct((n, OUT_PAD), jnp.float32),
        grid=grid,
        in_specs=[
            pl.BlockSpec((tile_dst, n), lambda i: (i, 0)),        # adjacency rows (int8)
            full(hs2),                                            # [N, hid]  (invariant)
            full(a_src2),                                         # [1, N]    (invariant)
            pl.BlockSpec((tile_dst, 1), lambda i: (i, 0)),        # dst-side score term
            full(params["b2"]), full(params["wc"]), full(params["bc"]),
        ],
        out_specs=pl.BlockSpec((tile_dst, OUT_PAD), lambda i: (i, 0)),
        compiler_params=cparams,
        cost_estimate=ce2,
    )(adj_i8, hs2, a_src2, a_dst2, params["b2"], params["wc"], params["bc"])

    emb = slab[:, :HIDDEN]
    logits = slab[:, HIDDEN:HIDDEN + 2]
    return emb, logits


# ---------------------------------------------------------------------------
# Pure-JAX f32 reference (mirrors PyG GATConv eval-mode semantics).
# ---------------------------------------------------------------------------

def gat_reference(x, adj, params):
    mask = adj > 0

    def gatconv(h, w, asrc, adst, b, concat):
        heads, hid = asrc.shape
        hs = h @ w
        hsr = hs.reshape(-1, heads, hid)                       # [N, H, hid]
        a_s = jnp.einsum('nhd,hd->hn', hsr, asrc)              # [H, N]
        a_d = jnp.einsum('nhd,hd->hn', hsr, adst)              # [H, N]
        e = a_d[:, :, None] + a_s[:, None, :]                  # [H, Ndst, Nsrc]
        e = jnp.where(e > 0, e, _LEAKY * e)
        e = jnp.where(mask[None], e, _NEG)
        e = e - e.max(axis=-1, keepdims=True)
        p = jnp.exp(e)
        alpha = p / p.sum(axis=-1, keepdims=True)
        out = jnp.einsum('hij,jhd->ihd', alpha, hsr)           # [N, H, hid]
        out = out.reshape(-1, heads * hid) if concat else out.mean(axis=1)
        return out + b

    h1 = jax.nn.relu(gatconv(x, params["w1"], params["asrc1"], params["adst1"],
                             params["b1"], True))
    emb = gatconv(h1, params["w2"], params["asrc2"], params["adst2"],
                  params["b2"], False)
    logits = emb @ params["wc"] + params["bc"]
    return emb, logits


if __name__ == "__main__":
    key = jax.random.PRNGKey(0)
    k = jax.random.split(key, 10)

    N, IN = 64, 32                                   # num_nodes, in_channels
    x = jax.random.normal(k[0], (N, IN), jnp.float32)

    # Deterministic graph: bidirectional ring + chords, COO edge_index [2, E]
    idx = jnp.arange(N)
    src = jnp.concatenate([idx, (idx + 1) % N, idx])
    dst = jnp.concatenate([(idx + 1) % N, idx, (idx + 5) % N])
    edge_index = jnp.stack([src, dst])               # [2, 3N]

    # Dense adjacency mask adj[dst, src] = 1, plus self loops (GATConv default).
    adj = jnp.zeros((N, N), jnp.float32).at[edge_index[1], edge_index[0]].set(1.0)
    adj = adj.at[idx, idx].set(1.0)

    def glorot(kk, shape):
        fan = shape[0] + shape[-1]
        return jax.random.normal(kk, shape, jnp.float32) * jnp.sqrt(2.0 / fan)

    params = dict(
        # conv1: GATConv(IN, HIDDEN, heads=HEADS)
        w1=glorot(k[1], (IN, HEADS * HIDDEN)),
        asrc1=glorot(k[2], (HEADS, HIDDEN)),
        adst1=glorot(k[3], (HEADS, HIDDEN)),
        b1=jnp.zeros((1, HEADS * HIDDEN), jnp.float32),
        # conv2: GATConv(HEADS*HIDDEN, HIDDEN, heads=1, concat=False)
        w2=glorot(k[4], (HEADS * HIDDEN, HIDDEN)),
        asrc2=glorot(k[5], (1, HIDDEN)),
        adst2=glorot(k[6], (1, HIDDEN)),
        b2=jnp.zeros((1, HIDDEN), jnp.float32),
        # classifier: Linear(HIDDEN, 2)
        wc=glorot(k[7], (HIDDEN, 2)),
        bc=jnp.zeros((1, 2), jnp.float32),
    )

    # tile_dst=32 -> 2 destination-row grid steps (exercises pipelining / both cores)
    emb, logits = gat_forward(x, adj, params, tile_dst=32)
    jax.block_until_ready((emb, logits))
    assert emb.shape == (N, HIDDEN) and emb.dtype == jnp.float32
    assert logits.shape == (N, 2) and logits.dtype == jnp.float32

    # correctness vs pure-JAX f32 reference (loose tolerance: bf16 storage of the
    # projected features / h1 / alpha and the approx EUP reciprocal)
    emb_ref, logits_ref = gat_reference(x, adj, params)
    assert float(jnp.max(jnp.abs(emb - emb_ref))) < 0.15
    assert float(jnp.max(jnp.abs(logits - logits_ref))) < 0.15

    print("KERNEL_OK")
</pallas_src>

<mosaic_0001>
module attributes {stable_mosaic.version = 11 : i64} {
  func.func @_project1_kernel(%arg0: i32, %arg1: memref<64x32xf32, #tpu.memory_space<vmem>>, %arg2: memref<32x64xf32, #tpu.memory_space<vmem>>, %arg3: memref<8x64xf32, #tpu.memory_space<vmem>>, %arg4: memref<64x8xf32, #tpu.memory_space<vmem>>, %arg5: memref<8x64x8xbf16, #tpu.memory_space<vmem>>, %arg6: memref<8x1x64xf32, #tpu.memory_space<vmem>>, %arg7: memref<64x8xf32, #tpu.memory_space<vmem>>) attributes {dimension_semantics = [#tpu.dimension_semantics<arbitrary>], iteration_bounds = array<i64: 1>, scalar_prefetch = 0 : i64, scratch_operands = 0 : i64, tpu.core_type = #tpu.core_type<tc>, window_params = [{pipeline_mode = #tpu.pipeline_mode<synchronous>, transform_indices = @transform_0, window_bounds = array<i64: 64, 32>}, {pipeline_mode = #tpu.pipeline_mode<synchronous>, transform_indices = @transform_1, window_bounds = array<i64: 32, 64>}, {pipeline_mode = #tpu.pipeline_mode<synchronous>, transform_indices = @transform_2, window_bounds = array<i64: 8, 64>}, {pipeline_mode = #tpu.pipeline_mode<synchronous>, transform_indices = @transform_3, window_bounds = array<i64: 64, 8>}, {pipeline_mode = #tpu.pipeline_mode<synchronous>, transform_indices = @transform_4, window_bounds = array<i64: 8, 64, 8>}, {pipeline_mode = #tpu.pipeline_mode<synchronous>, transform_indices = @transform_5, window_bounds = array<i64: 8, 1, 64>}, {pipeline_mode = #tpu.pipeline_mode<synchronous>, transform_indices = @transform_6, window_bounds = array<i64: 64, 8>}]} {
    %c0 = arith.constant 0 : index
    %c0_0 = arith.constant 0 : index
    %0 = vector.load %arg1[%c0, %c0_0] : memref<64x32xf32, #tpu.memory_space<vmem>>, vector<64x32xf32>
    %1 = arith.truncf %0 : vector<64x32xf32> to vector<64x32xbf16>
    %c0_1 = arith.constant 0 : index
    %c0_2 = arith.constant 0 : index
    %2 = vector.load %arg2[%c0_1, %c0_2] : memref<32x64xf32, #tpu.memory_space<vmem>>, vector<32x64xf32>
    %3 = arith.truncf %2 : vector<32x64xf32> to vector<32x64xbf16>
    %cst = arith.constant dense<0.000000e+00> : vector<64x64xf32>
    %4 = tpu.matmul %1, %3, %cst {dimension_numbers = #tpu.dot_dimension_numbers<[1], [0], [0], [1], [0, 0, 1, 1], [], []>} : vector<64x32xbf16>, vector<32x64xbf16>, vector<64x64xf32> -> vector<64x64xf32>
    %c0_3 = arith.constant 0 : index
    %c0_4 = arith.constant 0 : index
    %5 = vector.load %arg3[%c0_3, %c0_4] : memref<8x64xf32, #tpu.memory_space<vmem>>, vector<8x64xf32>
    "tpu.trace_start"() <{level = 10 : i32, message = "hf,nf->hn"}> : () -> ()
    %cst_5 = arith.constant dense<0.000000e+00> : vector<8x64xf32>
    %6 = tpu.matmul %5, %4, %cst_5 {dimension_numbers = #tpu.dot_dimension_numbers<[1], [1], [0], [0], [0, 0, 1, 0], [], []>} : vector<8x64xf32>, vector<64x64xf32>, vector<8x64xf32> -> vector<8x64xf32>
    "tpu.trace_stop"() : () -> ()
    %7 = vector.shape_cast %6 : vector<8x64xf32> to vector<8x1x64xf32>
    %c0_6 = arith.constant 0 : index
    %c0_7 = arith.constant 0 : index
    %c0_8 = arith.constant 0 : index
    %8 = vector.load %arg6[%c0_6, %c0_7, %c0_8] : memref<8x1x64xf32, #tpu.memory_space<vmem>>, vector<8x1x64xf32>
    tpu.vector_store %arg6[%c0_6, %c0_7, %c0_8], %7 {strides = array<i32>} : memref<8x1x64xf32, #tpu.memory_space<vmem>>, vector<8x1x64xf32>,
    %c0_9 = arith.constant 0 : index
    %c0_10 = arith.constant 0 : index
    %9 = vector.load %arg4[%c0_9, %c0_10] : memref<64x8xf32, #tpu.memory_space<vmem>>, vector<64x8xf32>
    %cst_11 = arith.constant dense<0.000000e+00> : vector<64x8xf32>
    %10 = tpu.matmul %4, %9, %cst_11 {dimension_numbers = #tpu.dot_dimension_numbers<[1], [0], [0], [1], [0, 0, 1, 1], [], []>} : vector<64x64xf32>, vector<64x8xf32>, vector<64x8xf32> -> vector<64x8xf32>
    %c0_12 = arith.constant 0 : index
    %c0_13 = arith.constant 0 : index
    %11 = vector.load %arg7[%c0_12, %c0_13] : memref<64x8xf32, #tpu.memory_space<vmem>>, vector<64x8xf32>
    tpu.vector_store %arg7[%c0_12, %c0_13], %10 {strides = array<i32>} : memref<64x8xf32, #tpu.memory_space<vmem>>, vector<64x8xf32>,
    %12 = vector.extract_strided_slice %4 {offsets = [0, 0], sizes = [64, 8], strides = [1, 1]} : vector<64x64xf32> to vector<64x8xf32>
    %13 = vector.extract_strided_slice %4 {offsets = [0, 8], sizes = [64, 8], strides = [1, 1]} : vector<64x64xf32> to vector<64x8xf32>
    %14 = vector.extract_strided_slice %4 {offsets = [0, 16], sizes = [64, 8], strides = [1, 1]} : vector<64x64xf32> to vector<64x8xf32>
    %15 = vector.extract_strided_slice %4 {offsets = [0, 24], sizes = [64, 8], strides = [1, 1]} : vector<64x64xf32> to vector<64x8xf32>
    %16 = vector.extract_strided_slice %4 {offsets = [0, 32], sizes = [64, 8], strides = [1, 1]} : vector<64x64xf32> to vector<64x8xf32>
    %17 = vector.extract_strided_slice %4 {offsets = [0, 40], sizes = [64, 8], strides = [1, 1]} : vector<64x64xf32> to vector<64x8xf32>
    %18 = vector.extract_strided_slice %4 {offsets = [0, 48], sizes = [64, 8], strides = [1, 1]} : vector<64x64xf32> to vector<64x8xf32>
    %19 = vector.extract_strided_slice %4 {offsets = [0, 56], sizes = [64, 8], strides = [1, 1]} : vector<64x64xf32> to vector<64x8xf32>
    %20 = vector.shape_cast %12 : vector<64x8xf32> to vector<1x64x8xf32>
    %21 = vector.shape_cast %13 : vector<64x8xf32> to vector<1x64x8xf32>
    %22 = vector.shape_cast %14 : vector<64x8xf32> to vector<1x64x8xf32>
    %23 = vector.shape_cast %15 : vector<64x8xf32> to vector<1x64x8xf32>
    %24 = vector.shape_cast %16 : vector<64x8xf32> to vector<1x64x8xf32>
    %25 = vector.shape_cast %17 : vector<64x8xf32> to vector<1x64x8xf32>
    %26 = vector.shape_cast %18 : vector<64x8xf32> to vector<1x64x8xf32>
    %27 = vector.shape_cast %19 : vector<64x8xf32> to vector<1x64x8xf32>
    %28 = tpu.concatenate %20, %21, %22, %23, %24, %25, %26, %27 in 0 : vector<1x64x8xf32>, vector<1x64x8xf32>, vector<1x64x8xf32>, vector<1x64x8xf32>, vector<1x64x8xf32>, vector<1x64x8xf32>, vector<1x64x8xf32>, vector<1x64x8xf32> -> vector<8x64x8xf32>
    %29 = arith.truncf %28 : vector<8x64x8xf32> to vector<8x64x8xbf16>
    %c0_14 = arith.constant 0 : index
    %c0_15 = arith.constant 0 : index
    %c0_16 = arith.constant 0 : index
    %30 = vector.load %arg5[%c0_14, %c0_15, %c0_16] : memref<8x64x8xbf16, #tpu.memory_space<vmem>>, vector<8x64x8xbf16>
    tpu.vector_store %arg5[%c0_14, %c0_15, %c0_16], %29 {strides = array<i32>} : memref<8x64x8xbf16, #tpu.memory_space<vmem>>, vector<8x64x8xbf16>,
    return
  }
  func.func @transform_0(%arg0: i32) -> (i32, i32) {
    %c0_i32 = arith.constant 0 : i32
    %c0_i32_0 = arith.constant 0 : i32
    %c0_i32_1 = arith.constant 0 : i32
    return %c0_i32, %c0_i32_0 : i32, i32
  }
  func.func @transform_1(%arg0: i32) -> (i32, i32) {
    %c0_i32 = arith.constant 0 : i32
    %c0_i32_0 = arith.constant 0 : i32
    %c0_i32_1 = arith.constant 0 : i32
    return %c0_i32, %c0_i32_0 : i32, i32
  }
  func.func @transform_2(%arg0: i32) -> (i32, i32) {
    %c0_i32 = arith.constant 0 : i32
    %c0_i32_0 = arith.constant 0 : i32
    %c0_i32_1 = arith.constant 0 : i32
    return %c0_i32, %c0_i32_0 : i32, i32
  }
  func.func @transform_3(%arg0: i32) -> (i32, i32) {
    %c0_i32 = arith.constant 0 : i32
    %c0_i32_0 = arith.constant 0 : i32
    %c0_i32_1 = arith.constant 0 : i32
    return %c0_i32, %c0_i32_0 : i32, i32
  }
  func.func @transform_4(%arg0: i32) -> (i32, i32, i32) {
    %c0_i32 = arith.constant 0 : i32
    %c0_i32_0 = arith.constant 0 : i32
    %c0_i32_1 = arith.constant 0 : i32
    %c0_i32_2 = arith.constant 0 : i32
    return %c0_i32, %c0_i32_0, %c0_i32_1 : i32, i32, i32
  }
  func.func @transform_5(%arg0: i32) -> (i32, i32, i32) {
    %c0_i32 = arith.constant 0 : i32
    %c0_i32_0 = arith.constant 0 : i32
    %c0_i32_1 = arith.constant 0 : i32
    %c0_i32_2 = arith.constant 0 : i32
    return %c0_i32, %c0_i32_0, %c0_i32_1 : i32, i32, i32
  }
  func.func @transform_6(%arg0: i32) -> (i32, i32) {
    %c0_i32 = arith.constant 0 : i32
    %c0_i32_0 = arith.constant 0 : i32
    %c0_i32_1 = arith.constant 0 : i32
    return %c0_i32, %c0_i32_0 : i32, i32
  }
}

</mosaic_0001>

<bundles_post_ra>
// kernel: tpu_custom_call.1
= control target key start
LH: loop header
LB: loop body
LE: loop exit
PB: predicated region body
PF: predicated region fallthrough
CT: control target
= control target key end

     0   :  { %s1215_s0 = inlined_call_operand.vmem [shape: f32[64,32], index: 0, kind: input, shape index: {}]   ;;  %s1216_s1 = inlined_call_operand.vmem [shape: f32[32,64], index: 1, kind: input, shape index: {}]   ;;  %s1217_s2 = inlined_call_operand.vmem [shape: f32[8,64], index: 2, kind: input, shape index: {}]   ;;  %s1218_s3 = inlined_call_operand.vmem [shape: f32[64,8], index: 3, kind: input, shape index: {}]   ;;  %s1219_s4 = inlined_call_operand.vmem [shape: bf16[8,64,8], index: 4, kind: output, shape index: {0}]   ;;  %s1220_s5 = inlined_call_operand.hbm [shape: f32[8,1,64], index: 5, kind: output, shape index: {1}]   ;;  %s1221_s6 = inlined_call_operand.vmem [shape: f32[64,8], index: 6, kind: output, shape index: {2}]  }
   0x1   :  { %v36_v0 = vld [vmem:[%s1216_s1 + $0x10] sm:$0xff]  ;;  %v37_v1 = vld [vmem:[%s1216_s1 + $0x18] sm:$0xff]  ;;  %v34_v2 = vld [vmem:[%s1216_s1] sm:$0xff] }
   0x2   :  { %v39_v3 = vpack.c.bf16 %v37_v1, %v36_v0  ;;  %v35_v4 = vld [vmem:[%s1216_s1 + $0x8] sm:$0xff]  ;;  %v22_v5 = vld [vmem:[%s1215_s0] sm:$0xff]  ;;  %v162_v10 = vld [vmem:[%s1218_s3 + $0x38] sm:$0xff] }
   0x3   :  { %v38_v6 = vpack.c.bf16 %v35_v4, %v34_v2  ;;  %v23_v7 = vld [vmem:[%s1215_s0 + $0x8] sm:$0xff]  ;;  %v26_v8 = vld [vmem:[%s1215_s0 + $0x20] sm:$0xff]  ;;  %559 = vmatpush.msra.mxu2 %v162_v10  ;;  %560 = vmatpush.msra.mxu3 %v162_v10 }
   0x4   :  { %59 = vmatpush.bf16.msra.mxu0 %v39_v3  ;;  %557 = vmatpush.bf16.msra.mxu1 %v39_v3  ;;  %v27_v9 = vld [vmem:[%s1215_s0 + $0x28] sm:$0xff]  ;;  %v30_v11 = vpack.c.bf16 %v23_v7, %v22_v5 }
   0x5   :  { %v32_v12 = vpack.c.bf16 %v27_v9, %v26_v8 }
   0x6   :  { %12 = vsyncpa [#allocation3], 0  ;;  %vm40_vm0 = vcmask 261120   ;;  %v161_v13 = vld [vmem:[%s1218_s3 + $0x30] sm:$0xff]  ;;  %v160_v14 = vld [vmem:[%s1218_s3 + $0x28] sm:$0xff]  ;;  %vm83_vm1 = vcmask 523264  }
   0x7   :  { %561 = vmatpush.msra.mxu2 %v161_v13  ;;  %562 = vmatpush.msra.mxu3 %v161_v13  ;;  %v159_v15 = vld [vmem:[%s1218_s3 + $0x20] sm:$0xff]  ;;  %v158_v16 = vld [vmem:[%s1218_s3 + $0x18] sm:$0xff]  ;;  %v157_v17 = vld [vmem:[%s1218_s3 + $0x10] sm:$0xff]  ;;  %vm445_vm2 = vcmask 60416   ;;  %s751_s15 = smov 120   ;;  %s752_s18 = smov 112  }
   0x8   :  { %60 = vmatpush.bf16.msra.mxu0 %v38_v6  ;;  %558 = vmatpush.bf16.msra.mxu1 %v38_v6  ;;  %v24_v18 = vld [vmem:[%s1215_s0 + $0x10] sm:$0xff]  ;;  %v156_v19 = vld [vmem:[%s1218_s3 + $0x8] sm:$0xff]  ;;  %v25_v20 = vld [vmem:[%s1215_s0 + $0x18] sm:$0xff]  ;;  %s753_s21 = smov 104   ;;  %s754_s26 = smov 88   ;;  %vm204_vm3 = vcmask 64512  }
   0x9   :  { %563 = vmatpush.msra.mxu2 %v160_v14  ;;  %564 = vmatpush.msra.mxu3 %v160_v14  ;;  %v28_v21 = vld [vmem:[%s1215_s0 + $0x30] sm:$0xff]  ;;  %v29_v22 = vld [vmem:[%s1215_s0 + $0x38] sm:$0xff]  ;;  %v31_v23 = vpack.c.bf16 %v25_v20, %v24_v18  ;;  %v155_v25 = vld [vmem:[%s1218_s3] sm:$0xff]  ;;  %s755_s29 = smov 96   ;;  %s756_s30 = smov 80   ;;  %vm146_vm4 = vcmask 516096  }
   0xa   :  { %v33_v24 = vpack.c.bf16 %v29_v22, %v28_v21  ;;  %s757_s7 = smov 72   ;;  %v82_v46 = vld [vmem:[%s1217_s2] sm:$0xff]  ;;  %s758_s0 = smov [#allocation2]  }
   0xb   :  { %536 = vmatmul.msk.bf16.vlgmr.msra.gmra.mxu0 %vm40_vm0, %v30_v11  ;;  %538 = vmatmul.msk.bf16.vlgmr.msra.gmra.mxu1 %vm40_vm0, %v32_v12  ;;  %s516_s12 = sshll.u32 %s758_s0, 4  ;;  %s518_s13 = sshll.u32 %s1220_s5, 4  ;;  %s517_s12 = int_to_ptr.vmem [resolvable:$true] %s516_s12  ;;  %s519_s13 = int_to_ptr.hbm [resolvable:$true] %s518_s13 }
   0xc   :  { %171 = vmatpush.msrb.mxu0 %v162_v10  ;;  %565 = vmatpush.msra.mxu2 %v159_v15  ;;  %s759_s20 = smov 16  }
   0xd   :  { %566 = vmatpush.msra.mxu3 %v159_v15 }
   0xe   :  { %172 = vmatpush.msrb.mxu0 %v161_v13  ;;  %567 = vmatpush.msra.mxu2 %v158_v16 }
   0xf   :  { %568 = vmatpush.msra.mxu3 %v158_v16 }
  0x10   :  { %173 = vmatpush.msrb.mxu0 %v160_v14  ;;  %569 = vmatpush.msra.mxu2 %v157_v17 }
  0x11   :  { %570 = vmatpush.msra.mxu3 %v157_v17 }
  0x12   :  { %174 = vmatpush.msrb.mxu0 %v159_v15  ;;  %571 = vmatpush.msra.mxu2 %v156_v19 }
  0x13   :  { %572 = vmatpush.msra.mxu3 %v156_v19 }
  0x14   :  { %175 = vmatpush.msrb.mxu0 %v158_v16  ;;  %573 = vmatpush.msra.mxu2 %v155_v25 }
  0x15   :  { %574 = vmatpush.msra.mxu3 %v155_v25 }
  0x16   :  { %176 = vmatpush.msrb.mxu0 %v157_v17 }
  0x18   :  { %177 = vmatpush.msrb.mxu0 %v156_v19 }
  0x1a   :  { %178 = vmatpush.msrb.mxu0 %v155_v25 }
  0x1b   :  { %537 = vmatmul.msk.bf16.gmra.mxu0 %vm40_vm0, %v31_v23  ;;  %539 = vmatmul.msk.bf16.gmra.mxu1 %vm40_vm0, %v33_v24 }
  0x88   :  { %v860_v26 = vpop.f32.mrf.mxu0  ;;  %v72_v27 = vpop.f32.mrf.mxu1 }
  0x89   :  { %v381_v28 = vpack.c.bf16 %v860_v26, %v860_v26  ;;  %v385_v29 = vpack.c.bf16 %v72_v27, %v72_v27  ;;  %549 = vmatmul.msk.f32.vlgmr.msrb.gmra.mxu0 %vm83_vm1, %v860_v26 }
  0x8b   :  { %446 = vst.msk [vmem:[%s1219_s4] sm:$0xf] %vm445_vm2, %v381_v28 }
  0x8c   :  { %450 = vst.msk [vmem:[%s1219_s4 + $0x10] sm:$0xf] %vm445_vm2, %v385_v29 }
  0x90   :  { %v64_v30 = vpop.f32.mrf.mxu0  ;;  %v74_v31 = vpop.f32.mrf.mxu1 }
  0x91   :  { %v382_v32 = vpack.c.bf16 %v64_v30, %v64_v30  ;;  %v386_v33 = vpack.c.bf16 %v74_v31, %v74_v31  ;;  %550 = vmatmul.msk.f32.vlgmr.msra.gmra.mxu2 %vm83_vm1, %v64_v30  ;;  %554 = vmatmul.msk.f32.vlgmr.msra.gmra.mxu3 %vm83_vm1, %v74_v31  ;;  %v876_v34 = vpack.i.bf16 %v74_v31, %v72_v27 }
  0x92   :  { %v595_v35 = vpack.i.bf16 %v64_v30, %v860_v26 }
  0x93   :  { %447 = vst.msk [vmem:[%s1219_s4 + $0x4] sm:$0xf] %vm445_vm2, %v382_v32  ;;  %591 = vrot.lane.b32.xlu1 %v876_v34, %s751_s15 }
  0x94   :  { %451 = vst.msk [vmem:[%s1219_s4 + $0x14] sm:$0xf] %vm445_vm2, %v386_v33  ;;  %596 = vrot.lane.b32.xlu2 %v595_v35, %s752_s18  ;;  %586 = vrot.lane.b32.xlu0 %v595_v35, %s751_s15 }
  0x98   :  { %v67_v36 = vpop.f32.mrf.mxu0  ;;  %v77_v37 = vpop.f32.mrf.mxu1 }
  0x99   :  { %v383_v38 = vpack.c.bf16 %v67_v36, %v67_v36  ;;  %v387_v39 = vpack.c.bf16 %v77_v37, %v77_v37  ;;  %551 = vmatmul.msk.f32.gmra.mxu2 %vm83_vm1, %v67_v36  ;;  %555 = vmatmul.msk.f32.gmra.mxu3 %vm83_vm1, %v77_v37 }
  0x9b   :  { %448 = vst.msk [vmem:[%s1219_s4 + $0x8] sm:$0xf] %vm445_vm2, %v383_v38  ;;  %611 = vrot.lane.b32.xlu1 %v876_v34, %s753_s21 }
  0x9c   :  { %452 = vst.msk [vmem:[%s1219_s4 + $0x18] sm:$0xf] %vm445_vm2, %v387_v39  ;;  %606 = vrot.lane.b32.xlu2 %v595_v35, %s753_s21  ;;  %601 = vrot.lane.b32.xlu0 %v876_v34, %s752_s18 }
  0xa0   :  { %v69_v40 = vpop.f32.mrf.mxu0  ;;  %v79_v41 = vpop.f32.mrf.mxu1 }
  0xa1   :  { %v384_v42 = vpack.c.bf16 %v69_v40, %v69_v40  ;;  %v388_v43 = vpack.c.bf16 %v79_v41, %v79_v41  ;;  %540 = vmatpush.xpose.msk.msrb.mxu1 %vm83_vm1, %v79_v41  ;;  %552 = vmatmul.msk.f32.gmra.mxu2 %vm83_vm1, %v69_v40  ;;  %v660_v44 = vpack.i.bf16 %v69_v40, %v67_v36 }
  0xa2   :  { %556 = vmatmul.msk.f32.gmra.mxu3 %vm83_vm1, %v79_v41  ;;  %v655_v45 = vpack.i.bf16 %v79_v41, %v77_v37 }
  0xa3   :  { %449 = vst.msk [vmem:[%s1219_s4 + $0xc] sm:$0xf] %vm445_vm2, %v384_v42  ;;  %626 = vrot.lane.b32.xlu1 %v595_v35, %s754_s26 }
  0xa4   :  { %453 = vst.msk [vmem:[%s1219_s4 + $0x1c] sm:$0xf] %vm445_vm2, %v388_v43  ;;  %621 = vrot.lane.b32.xlu2 %v876_v34, %s755_s29  ;;  %616 = vrot.lane.b32.xlu0 %v595_v35, %s755_s29 }
  0xa5   :  { %541 = vmatpush.xpose.msk.msrb.mxu1 %vm83_vm1, %v77_v37 }
  0xa9   :  { %542 = vmatpush.xpose.msk.msrb.mxu1 %vm83_vm1, %v74_v31  ;;  %553 = vmatmul.msk.f32.gmra.mxu2 %vm83_vm1, %v72_v27 }
  0xab   :  { %641 = vrot.lane.b32.xlu1 %v876_v34, %s756_s30 }
  0xac   :  { %636 = vrot.lane.b32.xlu2 %v595_v35, %s756_s30  ;;  %631 = vrot.lane.b32.xlu0 %v876_v34, %s754_s26 }
  0xad   :  { %543 = vmatpush.xpose.msk.msrb.mxu1 %vm83_vm1, %v72_v27 }
  0xb1   :  { %544 = vmatpush.xpose.msk.msrb.mxu1 %vm83_vm1, %v69_v40 }
  0xb3   :  { %656 = vrot.lane.b32.xlu1 %v655_v45, %s751_s15 }
  0xb4   :  { %646 = vrot.lane.b32.xlu0 %v595_v35, %s757_s7  ;;  %661 = vrot.lane.b32.xlu2 %v660_v44, %s752_s18 }
  0xb5   :  { %545 = vmatpush.xpose.msk.msrb.mxu1 %vm83_vm1, %v67_v36 }
  0xb9   :  { %546 = vmatpush.xpose.msk.msrb.mxu1 %vm83_vm1, %v64_v30 }
  0xbb   :  { %666 = vrot.lane.b32.xlu1 %v655_v45, %s752_s18 }
  0xbc   :  { %676 = vrot.lane.b32.xlu2 %v655_v45, %s753_s21  ;;  %651 = vrot.lane.b32.xlu0 %v660_v44, %s751_s15 }
  0xbd   :  { %547 = vmatpush.xpose.msk.msrb.mxu1 %vm83_vm1, %v860_v26 }
  0xc0   :  { %548 = vmatmul.msk.f32.vlgmr.msrb.gmra.mxu1 %vm83_vm1, %v82_v46 }
  0xc3   :  { %681 = vrot.lane.b32.xlu1 %v660_v44, %s755_s29 }
  0xc4   :  { %691 = vrot.lane.b32.xlu2 %v660_v44, %s754_s26  ;;  %671 = vrot.lane.b32.xlu0 %v660_v44, %s753_s21  ;;  %s760_s21 = smov 1  }
  0xcb   :  { %696 = vrot.lane.b32.xlu1 %v655_v45, %s754_s26 }
  0xcc   :  { %706 = vrot.lane.b32.xlu2 %v655_v45, %s756_s30  ;;  %686 = vrot.lane.b32.xlu0 %v655_v45, %s755_s29 }
  0xd3   :  { %711 = vrot.lane.b32.xlu1 %v660_v44, %s757_s7 }
  0xd4   :  { %716 = vrot.lane.b32.xlu2 %v876_v34, %s757_s7  ;;  %701 = vrot.lane.b32.xlu0 %v660_v44, %s756_s30 }
  0xdc   :  { %721 = vrot.lane.b32.xlu0 %v655_v45, %s757_s7 }
  0xee   :  { %v597_v47 = vpop.permute.xlu2 %596 }
  0xef   :  { %v599_v48 = vunpack.i.h.bf16 %v597_v47  ;;  %v598_v49 = vunpack.i.l.bf16 %v597_v47 }
  0xf1   :  { %v398_v50 = vpack.c.bf16 %v599_v48, %v599_v48  ;;  %v397_v51 = vpack.c.bf16 %v598_v49, %v598_v49 }
  0xf3   :  { %463 = vst.msk [vmem:[%s1219_s4 + $0x44] sm:$0xf] %vm445_vm2, %v398_v50 }
  0xf4   :  { %462 = vst.msk [vmem:[%s1219_s4 + $0x40] sm:$0xf] %vm445_vm2, %v397_v51 }
  0xf6   :  { %v607_v52 = vpop.permute.xlu2 %606 }
  0xf7   :  { %v609_v53 = vunpack.i.h.bf16 %v607_v52  ;;  %v608_v54 = vunpack.i.l.bf16 %v607_v52 }
  0xf9   :  { %v406_v55 = vpack.c.bf16 %v609_v53, %v609_v53  ;;  %v405_v56 = vpack.c.bf16 %v608_v54, %v608_v54 }
  0xfb   :  { %471 = vst.msk [vmem:[%s1219_s4 + $0x64] sm:$0xf] %vm445_vm2, %v406_v55 }
  0xfc   :  { %470 = vst.msk [vmem:[%s1219_s4 + $0x60] sm:$0xf] %vm445_vm2, %v405_v56 }
  0xfe   :  { %v622_v57 = vpop.permute.xlu2 %621 }
  0xff   :  { %v624_v58 = vunpack.i.h.bf16 %v622_v57  ;;  %v623_v59 = vunpack.i.l.bf16 %v622_v57 }
 0x101   :  { %v418_v60 = vpack.c.bf16 %v624_v58, %v624_v58  ;;  %v417_v61 = vpack.c.bf16 %v623_v59, %v623_v59 }
 0x103   :  { %483 = vst.msk [vmem:[%s1219_s4 + $0x94] sm:$0xf] %vm445_vm2, %v418_v60 }
 0x104   :  { %482 = vst.msk [vmem:[%s1219_s4 + $0x90] sm:$0xf] %vm445_vm2, %v417_v61 }
 0x105   :  { %v592_v62 = vpop.permute.xlu1 %591 }
 0x106   :  { %v594_v63 = vunpack.i.h.bf16 %v592_v62  ;;  %v593_v0 = vunpack.i.l.bf16 %v592_v62  ;;  %v637_v1 = vpop.permute.xlu2 %636  ;;  %v587_v2 = vpop.permute.xlu0 %586 }
 0x107   :  { %v639_v3 = vunpack.i.h.bf16 %v637_v1  ;;  %v638_v4 = vunpack.i.l.bf16 %v637_v1  ;;  %v589_v5 = vunpack.i.h.bf16 %v587_v2  ;;  %v588_v6 = vunpack.i.l.bf16 %v587_v2  ;;  %v180_v7 = vpop.f32.mrf.mxu0 }
 0x108   :  { %v394_v8 = vpack.c.bf16 %v594_v63, %v594_v63  ;;  %v393_v9 = vpack.c.bf16 %v593_v0, %v593_v0  ;;  %205 = vst.msk [vmem:[%s1221_s6] sm:$0xff] %vm204_vm3, %v180_v7 }
 0x109   :  { %v430_v10 = vpack.c.bf16 %v639_v3, %v639_v3  ;;  %v429_v11 = vpack.c.bf16 %v638_v4, %v638_v4  ;;  %v390_v12 = vpack.c.bf16 %v589_v5, %v589_v5  ;;  %v389_v13 = vpack.c.bf16 %v588_v6, %v588_v6 }
 0x10a   :  { %459 = vst.msk [vmem:[%s1219_s4 + $0x34] sm:$0xf] %vm445_vm2, %v394_v8 }
 0x10b   :  { %458 = vst.msk [vmem:[%s1219_s4 + $0x30] sm:$0xf] %vm445_vm2, %v393_v9 }
 0x10c   :  { %495 = vst.msk [vmem:[%s1219_s4 + $0xc4] sm:$0xf] %vm445_vm2, %v430_v10 }
 0x10d   :  { %494 = vst.msk [vmem:[%s1219_s4 + $0xc0] sm:$0xf] %vm445_vm2, %v429_v11  ;;  %v612_v14 = vpop.permute.xlu1 %611 }
 0x10e   :  { %455 = vst.msk [vmem:[%s1219_s4 + $0x24] sm:$0xf] %vm445_vm2, %v390_v12  ;;  %v614_v15 = vunpack.i.h.bf16 %v612_v14  ;;  %v613_v16 = vunpack.i.l.bf16 %v612_v14  ;;  %v602_v17 = vpop.permute.xlu0 %601  ;;  %v662_v18 = vpop.permute.xlu2 %661 }
 0x10f   :  { %454 = vst.msk [vmem:[%s1219_s4 + $0x20] sm:$0xf] %vm445_vm2, %v389_v13  ;;  %v604_v19 = vunpack.i.h.bf16 %v602_v17  ;;  %v603_v20 = vunpack.i.l.bf16 %v602_v17  ;;  %v664_v21 = vunpack.i.h.bf16 %v662_v18  ;;  %v663_v22 = vunpack.i.l.bf16 %v662_v18 }
 0x110   :  { %v410_v23 = vpack.c.bf16 %v614_v15, %v614_v15  ;;  %v409_v24 = vpack.c.bf16 %v613_v16, %v613_v16 }
 0x111   :  { %v402_v25 = vpack.c.bf16 %v604_v19, %v604_v19  ;;  %v401_v26 = vpack.c.bf16 %v603_v20, %v603_v20  ;;  %v400_v27 = vpack.c.bf16 %v664_v21, %v664_v21  ;;  %v399_v28 = vpack.c.bf16 %v663_v22, %v663_v22 }
 0x112   :  { %475 = vst.msk [vmem:[%s1219_s4 + $0x74] sm:$0xf] %vm445_vm2, %v410_v23 }
 0x113   :  { %474 = vst.msk [vmem:[%s1219_s4 + $0x70] sm:$0xf] %vm445_vm2, %v409_v24 }
 0x114   :  { %467 = vst.msk [vmem:[%s1219_s4 + $0x54] sm:$0xf] %vm445_vm2, %v402_v25  ;;  %v183_v29 = vpop.f32.mrf.mxu2  ;;  %v195_v30 = vpop.f32.mrf.mxu3 }
 0x115   :  { %466 = vst.msk [vmem:[%s1219_s4 + $0x50] sm:$0xf] %vm445_vm2, %v401_v26  ;;  %v627_v31 = vpop.permute.xlu1 %626 }
 0x116   :  { %465 = vst.msk [vmem:[%s1219_s4 + $0x4c] sm:$0xf] %vm445_vm2, %v400_v27  ;;  %v629_v32 = vunpack.i.h.bf16 %v627_v31  ;;  %v628_v33 = vunpack.i.l.bf16 %v627_v31  ;;  %v617_v34 = vpop.permute.xlu0 %616  ;;  %v677_v35 = vpop.permute.xlu2 %676 }
 0x117   :  { %464 = vst.msk [vmem:[%s1219_s4 + $0x48] sm:$0xf] %vm445_vm2, %v399_v28  ;;  %v619_v36 = vunpack.i.h.bf16 %v617_v34  ;;  %v618_v37 = vunpack.i.l.bf16 %v617_v34  ;;  %v679_v38 = vunpack.i.h.bf16 %v677_v35  ;;  %v678_v39 = vunpack.i.l.bf16 %v677_v35 }
 0x118   :  { %206 = vst.msk [vmem:[%s1221_s6 + $0x8] sm:$0xff] %vm204_vm3, %v183_v29  ;;  %v422_v40 = vpack.c.bf16 %v629_v32, %v629_v32  ;;  %v421_v41 = vpack.c.bf16 %v628_v33, %v628_v33 }
 0x119   :  { %210 = vst.msk [vmem:[%s1221_s6 + $0x28] sm:$0xff] %vm204_vm3, %v195_v30  ;;  %v414_v42 = vpack.c.bf16 %v619_v36, %v619_v36  ;;  %v413_v43 = vpack.c.bf16 %v618_v37, %v618_v37  ;;  %v412_v44 = vpack.c.bf16 %v679_v38, %v679_v38  ;;  %v411_v45 = vpack.c.bf16 %v678_v39, %v678_v39 }
 0x11a   :  { %487 = vst.msk [vmem:[%s1219_s4 + $0xa4] sm:$0xf] %vm445_vm2, %v422_v40 }
 0x11b   :  { %486 = vst.msk [vmem:[%s1219_s4 + $0xa0] sm:$0xf] %vm445_vm2, %v421_v41 }
 0x11c   :  { %479 = vst.msk [vmem:[%s1219_s4 + $0x84] sm:$0xf] %vm445_vm2, %v414_v42  ;;  %v186_v46 = vpop.f32.mrf.mxu2  ;;  %v198_v47 = vpop.f32.mrf.mxu3 }
 0x11d   :  { %478 = vst.msk [vmem:[%s1219_s4 + $0x80] sm:$0xf] %vm445_vm2, %v413_v43  ;;  %v642_v48 = vpop.permute.xlu1 %641 }
 0x11e   :  { %477 = vst.msk [vmem:[%s1219_s4 + $0x7c] sm:$0xf] %vm445_vm2, %v412_v44  ;;  %v644_v49 = vunpack.i.h.bf16 %v642_v48  ;;  %v643_v50 = vunpack.i.l.bf16 %v642_v48  ;;  %v632_v51 = vpop.permute.xlu0 %631  ;;  %v692_v52 = vpop.permute.xlu2 %691 }
 0x11f   :  { %476 = vst.msk [vmem:[%s1219_s4 + $0x78] sm:$0xf] %vm445_vm2, %v411_v45  ;;  %v634_v53 = vunpack.i.h.bf16 %v632_v51  ;;  %v633_v54 = vunpack.i.l.bf16 %v632_v51  ;;  %v694_v55 = vunpack.i.h.bf16 %v692_v52  ;;  %v693_v56 = vunpack.i.l.bf16 %v692_v52 }
 0x120   :  { %207 = vst.msk [vmem:[%s1221_s6 + $0x10] sm:$0xff] %vm204_vm3, %v186_v46  ;;  %v434_v57 = vpack.c.bf16 %v644_v49, %v644_v49  ;;  %v433_v58 = vpack.c.bf16 %v643_v50, %v643_v50 }
 0x121   :  { %v426_v59 = vpack.c.bf16 %v634_v53, %v634_v53  ;;  %v425_v60 = vpack.c.bf16 %v633_v54, %v633_v54  ;;  %211 = vst.msk [vmem:[%s1221_s6 + $0x30] sm:$0xff] %vm204_vm3, %v198_v47  ;;  %v424_v61 = vpack.c.bf16 %v694_v55, %v694_v55  ;;  %v423_v62 = vpack.c.bf16 %v693_v56, %v693_v56 }
 0x122   :  { %499 = vst.msk [vmem:[%s1219_s4 + $0xd4] sm:$0xf] %vm445_vm2, %v434_v57 }
 0x123   :  { %498 = vst.msk [vmem:[%s1219_s4 + $0xd0] sm:$0xf] %vm445_vm2, %v433_v58 }
 0x124   :  { %491 = vst.msk [vmem:[%s1219_s4 + $0xb4] sm:$0xf] %vm445_vm2, %v426_v59  ;;  %v189_v63 = vpop.f32.mrf.mxu2 }
 0x125   :  { %490 = vst.msk [vmem:[%s1219_s4 + $0xb0] sm:$0xf] %vm445_vm2, %v425_v60  ;;  %v657_v0 = vpop.permute.xlu1 %656  ;;  %v201_v1 = vpop.f32.mrf.mxu3 }
 0x126   :  { %489 = vst.msk [vmem:[%s1219_s4 + $0xac] sm:$0xf] %vm445_vm2, %v424_v61  ;;  %v659_v2 = vunpack.i.h.bf16 %v657_v0  ;;  %v658_v3 = vunpack.i.l.bf16 %v657_v0  ;;  %v647_v4 = vpop.permute.xlu0 %646  ;;  %v707_v5 = vpop.permute.xlu2 %706 }
 0x127   :  { %488 = vst.msk [vmem:[%s1219_s4 + $0xa8] sm:$0xf] %vm445_vm2, %v423_v62  ;;  %v649_v6 = vunpack.i.h.bf16 %v647_v4  ;;  %v648_v7 = vunpack.i.l.bf16 %v647_v4  ;;  %v709_v8 = vunpack.i.h.bf16 %v707_v5  ;;  %v708_v9 = vunpack.i.l.bf16 %v707_v5 }
 0x128   :  { %208 = vst.msk [vmem:[%s1221_s6 + $0x18] sm:$0xff] %vm204_vm3, %v189_v63  ;;  %v396_v10 = vpack.c.bf16 %v659_v2, %v659_v2  ;;  %v395_v11 = vpack.c.bf16 %v658_v3, %v658_v3 }
 0x129   :  { %v438_v12 = vpack.c.bf16 %v649_v6, %v649_v6  ;;  %v437_v13 = vpack.c.bf16 %v648_v7, %v648_v7  ;;  %212 = vst.msk [vmem:[%s1221_s6 + $0x38] sm:$0xff] %vm204_vm3, %v201_v1  ;;  %v436_v14 = vpack.c.bf16 %v709_v8, %v709_v8  ;;  %v435_v15 = vpack.c.bf16 %v708_v9, %v708_v9 }
 0x12a   :  { %461 = vst.msk [vmem:[%s1219_s4 + $0x3c] sm:$0xf] %vm445_vm2, %v396_v10 }
 0x12b   :  { %460 = vst.msk [vmem:[%s1219_s4 + $0x38] sm:$0xf] %vm445_vm2, %v395_v11 }
 0x12c   :  { %503 = vst.msk [vmem:[%s1219_s4 + $0xe4] sm:$0xf] %vm445_vm2, %v438_v12  ;;  %v192_v16 = vpop.f32.mrf.mxu2 }
 0x12d   :  { %502 = vst.msk [vmem:[%s1219_s4 + $0xe0] sm:$0xf] %vm445_vm2, %v437_v13  ;;  %v667_v17 = vpop.permute.xlu1 %666 }
 0x12e   :  { %501 = vst.msk [vmem:[%s1219_s4 + $0xdc] sm:$0xf] %vm445_vm2, %v436_v14  ;;  %v669_v18 = vunpack.i.h.bf16 %v667_v17  ;;  %v668_v19 = vunpack.i.l.bf16 %v667_v17  ;;  %v717_v20 = vpop.permute.xlu2 %716  ;;  %v652_v21 = vpop.permute.xlu0 %651 }
 0x12f   :  { %500 = vst.msk [vmem:[%s1219_s4 + $0xd8] sm:$0xf] %vm445_vm2, %v435_v15  ;;  %v719_v22 = vunpack.i.h.bf16 %v717_v20  ;;  %v718_v23 = vunpack.i.l.bf16 %v717_v20  ;;  %v654_v24 = vunpack.i.h.bf16 %v652_v21  ;;  %v653_v25 = vunpack.i.l.bf16 %v652_v21 }
 0x130   :  { %209 = vst.msk [vmem:[%s1221_s6 + $0x20] sm:$0xff] %vm204_vm3, %v192_v16  ;;  %v404_v26 = vpack.c.bf16 %v669_v18, %v669_v18  ;;  %v403_v27 = vpack.c.bf16 %v668_v19, %v668_v19 }
 0x131   :  { %v442_v28 = vpack.c.bf16 %v719_v22, %v719_v22  ;;  %v441_v29 = vpack.c.bf16 %v718_v23, %v718_v23  ;;  %v392_v30 = vpack.c.bf16 %v654_v24, %v654_v24  ;;  %v391_v31 = vpack.c.bf16 %v653_v25, %v653_v25 }
 0x132   :  { %469 = vst.msk [vmem:[%s1219_s4 + $0x5c] sm:$0xf] %vm445_vm2, %v404_v26 }
 0x133   :  { %468 = vst.msk [vmem:[%s1219_s4 + $0x58] sm:$0xf] %vm445_vm2, %v403_v27 }
 0x134   :  { %507 = vst.msk [vmem:[%s1219_s4 + $0xf4] sm:$0xf] %vm445_vm2, %v442_v28 }
 0x135   :  { %506 = vst.msk [vmem:[%s1219_s4 + $0xf0] sm:$0xf] %vm445_vm2, %v441_v29  ;;  %v682_v32 = vpop.permute.xlu1 %681 }
 0x136   :  { %457 = vst.msk [vmem:[%s1219_s4 + $0x2c] sm:$0xf] %vm445_vm2, %v392_v30  ;;  %v684_v33 = vunpack.i.h.bf16 %v682_v32  ;;  %v683_v34 = vunpack.i.l.bf16 %v682_v32  ;;  %v672_v35 = vpop.permute.xlu0 %671 }
 0x137   :  { %456 = vst.msk [vmem:[%s1219_s4 + $0x28] sm:$0xf] %vm445_vm2, %v391_v31  ;;  %v674_v36 = vunpack.i.h.bf16 %v672_v35  ;;  %v673_v37 = vunpack.i.l.bf16 %v672_v35 }
 0x138   :  { %v416_v38 = vpack.c.bf16 %v684_v33, %v684_v33  ;;  %v415_v39 = vpack.c.bf16 %v683_v34, %v683_v34 }
 0x139   :  { %v408_v40 = vpack.c.bf16 %v674_v36, %v674_v36  ;;  %v407_v41 = vpack.c.bf16 %v673_v37, %v673_v37 }
 0x13a   :  { %481 = vst.msk [vmem:[%s1219_s4 + $0x8c] sm:$0xf] %vm445_vm2, %v416_v38 }
 0x13b   :  { %480 = vst.msk [vmem:[%s1219_s4 + $0x88] sm:$0xf] %vm445_vm2, %v415_v39 }
 0x13c   :  { %473 = vst.msk [vmem:[%s1219_s4 + $0x6c] sm:$0xf] %vm445_vm2, %v408_v40 }
 0x13d   :  { %472 = vst.msk [vmem:[%s1219_s4 + $0x68] sm:$0xf] %vm445_vm2, %v407_v41  ;;  %v697_v42 = vpop.permute.xlu1 %696  ;;  %v128_v43 = vpop.f32.mrf.mxu1 }
 0x13e   :  { %v699_v44 = vunpack.i.h.bf16 %v697_v42  ;;  %v698_v45 = vunpack.i.l.bf16 %v697_v42  ;;  %v687_v46 = vpop.permute.xlu0 %686  ;;  %v132_v47 = vrot.slane %v128_v43, 1  ;;  %v133_v48 = vrot.slane %v128_v43, 2  ;;  %147 = vst.msk [vmem:[#allocation2] sm:$0x1] %vm146_vm4, %v128_v43 }
 0x13f   :  { %v689_v49 = vunpack.i.h.bf16 %v687_v46  ;;  %v688_v50 = vunpack.i.l.bf16 %v687_v46  ;;  %v134_v55 = vrot.slane %v128_v43, 3  ;;  %v135_v56 = vrot.slane %v128_v43, 4 }
 0x140   :  { %v428_v51 = vpack.c.bf16 %v699_v44, %v699_v44  ;;  %v427_v52 = vpack.c.bf16 %v698_v45, %v698_v45  ;;  %148 = vst.msk [vmem:[#allocation2 + $0x1] sm:$0x1] %vm146_vm4, %v132_v47  ;;  %v136_v57 = vrot.slane %v128_v43, 5  ;;  %v137_v59 = vrot.slane %v128_v43, 6 }
 0x141   :  { %v420_v53 = vpack.c.bf16 %v689_v49, %v689_v49  ;;  %v419_v54 = vpack.c.bf16 %v688_v50, %v688_v50  ;;  %149 = vst.msk [vmem:[#allocation2 + $0x2] sm:$0x1] %vm146_vm4, %v133_v48  ;;  %v138_v5 = vrot.slane %v128_v43, 7 }
 0x142   :  { %493 = vst.msk [vmem:[%s1219_s4 + $0xbc] sm:$0xf] %vm445_vm2, %v428_v51 }
 0x143   :  { %492 = vst.msk [vmem:[%s1219_s4 + $0xb8] sm:$0xf] %vm445_vm2, %v427_v52 }
 0x144   :  { %485 = vst.msk [vmem:[%s1219_s4 + $0x9c] sm:$0xf] %vm445_vm2, %v420_v53 }
 0x145   :  { %484 = vst.msk [vmem:[%s1219_s4 + $0x98] sm:$0xf] %vm445_vm2, %v419_v54  ;;  %v712_v58 = vpop.permute.xlu1 %711 }
 0x146   :  { %v714_v60 = vunpack.i.h.bf16 %v712_v58  ;;  %v713_v61 = vunpack.i.l.bf16 %v712_v58  ;;  %v702_v62 = vpop.permute.xlu0 %701  ;;  %150 = vst.msk [vmem:[#allocation2 + $0x3] sm:$0x1] %vm146_vm4, %v134_v55 }
 0x147   :  { %v704_v63 = vunpack.i.h.bf16 %v702_v62  ;;  %v703_v0 = vunpack.i.l.bf16 %v702_v62  ;;  %151 = vst.msk [vmem:[#allocation2 + $0x4] sm:$0x1] %vm146_vm4, %v135_v56 }
 0x148   :  { %v440_v1 = vpack.c.bf16 %v714_v60, %v714_v60  ;;  %v439_v2 = vpack.c.bf16 %v713_v61, %v713_v61  ;;  %152 = vst.msk [vmem:[#allocation2 + $0x5] sm:$0x1] %vm146_vm4, %v136_v57 }
 0x149   :  { %v432_v3 = vpack.c.bf16 %v704_v63, %v704_v63  ;;  %v431_v4 = vpack.c.bf16 %v703_v0, %v703_v0  ;;  %153 = vst.msk [vmem:[#allocation2 + $0x6] sm:$0x1] %vm146_vm4, %v137_v59 }
 0x14a   :  { %505 = vst.msk [vmem:[%s1219_s4 + $0xec] sm:$0xf] %vm445_vm2, %v440_v1 }
 0x14b   :  { %504 = vst.msk [vmem:[%s1219_s4 + $0xe8] sm:$0xf] %vm445_vm2, %v439_v2 }
 0x14c   :  { %497 = vst.msk [vmem:[%s1219_s4 + $0xcc] sm:$0xf] %vm445_vm2, %v432_v3 }
 0x14d   :  { %496 = vst.msk [vmem:[%s1219_s4 + $0xc8] sm:$0xf] %vm445_vm2, %v431_v4 }
 0x14e   :  { %v722_v6 = vpop.permute.xlu0 %721  ;;  %154 = vst.msk [vmem:[#allocation2 + $0x7] sm:$0x1] %vm146_vm4, %v138_v5 }
 0x14f   :  { %v724_v7 = vunpack.i.h.bf16 %v722_v6  ;;  %v723_v8 = vunpack.i.l.bf16 %v722_v6  ;;  %524 = dma.vmem_to_hbm [thread:$0]  %s517_s12, 128, %s519_s13, [#allocation3], %s759_s20, %s759_s20, %s760_s21  }
 0x151   :  { %v444_v9 = vpack.c.bf16 %v724_v7, %v724_v7  ;;  %v443_v10 = vpack.c.bf16 %v723_v8, %v723_v8 }
 0x153   :  { %509 = vst.msk [vmem:[%s1219_s4 + $0xfc] sm:$0xf] %vm445_vm2, %v444_v9 }
 0x154   :  { %508 = vst.msk [vmem:[%s1219_s4 + $0xf8] sm:$0xf] %vm445_vm2, %v443_v10 }
 0x155   :  { %749 = dma.done.wait [#allocation3], 128  }
 0x156   :  { %750 = vsyncadd [#allocation3], 4294967168 }
 0x157   :  { %535 = vsyncpa [#allocation3], 1 }

</bundles_post_ra>
